<compile_context>
chip_gen: v7x
topology: tpu7x:2x2x1
jax: 0.10.0
libtpu: 0.0.40
codegen_flags: <defaults>
</compile_context>

<pallas_src>
import functools

import jax
import jax.numpy as jnp
from jax import lax
from jax.experimental import pallas as pl
from jax.experimental.pallas import tpu as pltpu

# ---- model hyper-parameters (small, consistent with the module) ----
D_MODEL = 32
D_K = 8
D_V = 8
N_HEADS = 4
DIM_FF = 64
BATCH = 2
SEQ = 8
LN_EPS = 1e-5
LANES = 128


def _layer_norm(x):
    # F.layer_norm over last dim, no weight/bias, biased variance, eps=1e-5
    mean = jnp.mean(x, axis=-1, keepdims=True)
    var = jnp.mean((x - mean) ** 2, axis=-1, keepdims=True)
    return (x - mean) * lax.rsqrt(var + LN_EPS)


def encoder_block_kernel(
    x_ref,        # (B*S, D) flattened activations
    w_ref,        # (D + d_ff, 128) packed weight slab
    b_ref,        # (8, 128)        packed bias slab
    o_ref,        # (B*S, D)
    *, batch, seq, n_heads, d_k, d_v, d_model, d_ff,
):
    f32 = jnp.float32
    x = x_ref[...].astype(f32)                       # (B*S, D)
    w = w_ref[...]                                   # (D+d_ff, 128)
    b = b_ref[...]                                   # (8, 128)

    hdk = n_heads * d_k
    hdv = n_heads * d_v
    qkv_cols = 2 * hdk + hdv                         # 96

    # static slab slices (sublane starts are multiples of d_model=32)
    wqkv = w[0:d_model, 0:qkv_cols]                          # (D, 96)
    wo = w[0:hdv, qkv_cols:qkv_cols + d_model]               # (H*d_v, D)
    w1 = w[d_model:2 * d_model, d_model:d_model + d_ff]      # (D, d_ff)
    w2 = w[d_model:d_model + d_ff, 0:d_model]                # (d_ff, D)

    bqkv = b[0:1, 0:qkv_cols]                                # (1, 96)
    bo = b[0:1, qkv_cols:qkv_cols + d_model]                 # (1, D)
    b1 = b[1:2, 0:d_ff]                                      # (1, d_ff)
    b2 = b[1:2, d_ff:d_ff + d_model]                         # (1, D)

    # --- fused Q/K/V projection: one lane-dense MXU push ---
    qkv = jnp.dot(x, wqkv, preferred_element_type=f32) + bqkv   # (B*S, 96)

    # reshape splits only the leading (sublane) dim: (B*S, hd) -> (B, S, hd)
    q = qkv[:, 0:hdk].reshape(batch, seq, hdk)
    k = qkv[:, hdk:2 * hdk].reshape(batch, seq, hdk)
    v = qkv[:, 2 * hdk:qkv_cols].reshape(batch, seq, hdv)

    scale = 1.0 / (float(d_k) ** 0.5)

    # --- multi-head self-attention: batched over B, short static unroll over H ---
    ctx_heads = []
    for h in range(n_heads):
        qh = q[:, :, h * d_k:(h + 1) * d_k]                  # (B, S, d_k)
        kh = k[:, :, h * d_k:(h + 1) * d_k]
        vh = v[:, :, h * d_v:(h + 1) * d_v]
        s = jnp.einsum('bqd,bkd->bqk', qh, kh,
                       preferred_element_type=f32) * scale   # (B, S, S)
        s = s - jnp.max(s, axis=-1, keepdims=True)
        p = jnp.exp(s)
        p = p / jnp.sum(p, axis=-1, keepdims=True)           # exact softmax
        ctx_heads.append(
            jnp.einsum('bqk,bkd->bqd', p, vh,
                       preferred_element_type=f32))          # (B, S, d_v)

    ctx = jnp.concatenate(ctx_heads, axis=-1)                # (B, S, H*d_v)
    ctx = ctx.reshape(batch * seq, hdv)                      # merge leading dims
    attn_out = jnp.dot(ctx, wo, preferred_element_type=f32) + bo   # (B*S, D)

    # dropout(p=0.1) is identity in eval mode
    sub1 = _layer_norm(attn_out + x)

    # --- position-wise feed-forward ---
    h1 = jnp.maximum(jnp.dot(sub1, w1, preferred_element_type=f32) + b1, 0.0)
    ffn = jnp.dot(h1, w2, preferred_element_type=f32) + b2

    # single contiguous, full-width store
    o_ref[...] = _layer_norm(ffn + sub1).astype(o_ref.dtype)


def _pack_params(params):
    """Pack all weights into a (D+d_ff, 128) slab and all biases into (8, 128)."""
    hdk = N_HEADS * D_K
    hdv = N_HEADS * D_V
    qkv_cols = 2 * hdk + hdv
    assert qkv_cols + D_MODEL <= LANES
    assert D_MODEL + DIM_FF <= LANES
    assert hdv <= D_MODEL and D_MODEL <= DIM_FF

    w_qkv = jnp.concatenate([params["wq"], params["wk"], params["wv"]], axis=1)
    b_qkv = jnp.concatenate([params["bq"], params["bk"], params["bv"]], axis=1)

    w_slab = jnp.zeros((D_MODEL + DIM_FF, LANES), jnp.float32)
    w_slab = w_slab.at[0:D_MODEL, 0:qkv_cols].set(w_qkv)
    w_slab = w_slab.at[0:hdv, qkv_cols:qkv_cols + D_MODEL].set(params["wo"])
    w_slab = w_slab.at[D_MODEL:2 * D_MODEL,
                       D_MODEL:D_MODEL + DIM_FF].set(params["w1"])
    w_slab = w_slab.at[D_MODEL:D_MODEL + DIM_FF, 0:D_MODEL].set(params["w2"])

    b_slab = jnp.zeros((8, LANES), jnp.float32)
    b_slab = b_slab.at[0:1, 0:qkv_cols].set(b_qkv)
    b_slab = b_slab.at[0:1, qkv_cols:qkv_cols + D_MODEL].set(params["bo"])
    b_slab = b_slab.at[1:2, 0:DIM_FF].set(params["b1"])
    b_slab = b_slab.at[1:2, DIM_FF:DIM_FF + D_MODEL].set(params["b2"])
    return w_slab, b_slab


def encoder_block(e, params):
    """e: (B, S, D) float32; params: dict of weights/biases (biases are (1, N))."""
    B, S, D = e.shape
    assert D == D_MODEL
    x = e.reshape(B * S, D)
    w_slab, b_slab = _pack_params(params)

    kernel = functools.partial(
        encoder_block_kernel,
        batch=B, seq=S, n_heads=N_HEADS, d_k=D_K, d_v=D_V,
        d_model=D, d_ff=DIM_FF,
    )

    def full_spec(arr):
        nd = arr.ndim
        return pl.BlockSpec(arr.shape, lambda i, _nd=nd: (0,) * _nd)

    out = pl.pallas_call(
        kernel,
        out_shape=jax.ShapeDtypeStruct((B * S, D), e.dtype),
        grid_spec=pltpu.PrefetchScalarGridSpec(
            num_scalar_prefetch=0,
            grid=(1,),                      # whole problem fits in one step
            in_specs=[full_spec(x), full_spec(w_slab), full_spec(b_slab)],
            out_specs=pl.BlockSpec((B * S, D), lambda i: (0, 0)),
        ),
        compiler_params=pltpu.CompilerParams(
            dimension_semantics=("arbitrary",)),
    )(x, w_slab, b_slab)
    return out.reshape(B, S, D)


def encoder_block_ref(e, params):
    """Pure-JAX reference (mirrors the PyTorch module in eval mode)."""
    B, S, D = e.shape
    x = e.reshape(B * S, D).astype(jnp.float32)
    q = x @ params["wq"] + params["bq"]
    k = x @ params["wk"] + params["bk"]
    v = x @ params["wv"] + params["bv"]
    rows_out = []
    for b in range(B):
        rows = slice(b * S, (b + 1) * S)
        heads = []
        for h in range(N_HEADS):
            qh = q[rows, h * D_K:(h + 1) * D_K]
            kh = k[rows, h * D_K:(h + 1) * D_K]
            vh = v[rows, h * D_V:(h + 1) * D_V]
            s = (qh @ kh.T) / jnp.sqrt(jnp.float32(D_K))
            p = jax.nn.softmax(s, axis=-1)
            heads.append(p @ vh)
        rows_out.append(jnp.concatenate(heads, axis=-1))
    concat = jnp.concatenate(rows_out, axis=0)
    attn_out = concat @ params["wo"] + params["bo"]

    def ln(t):
        m = jnp.mean(t, axis=-1, keepdims=True)
        var = jnp.mean((t - m) ** 2, axis=-1, keepdims=True)
        return (t - m) / jnp.sqrt(var + LN_EPS)

    sub1 = ln(attn_out + x)
    h1 = jnp.maximum(sub1 @ params["w1"] + params["b1"], 0.0)
    ffn = h1 @ params["w2"] + params["b2"]
    return ln(ffn + sub1).reshape(B, S, D)


def init_params(key):
    ks = jax.random.split(key, 12)

    def w(k, shape, fan_in):
        return (jax.random.normal(k, shape, jnp.float32) / jnp.sqrt(fan_in)).astype(
            jnp.float32
        )

    H = N_HEADS
    params = {
        "wq": w(ks[0], (D_MODEL, H * D_K), D_MODEL),
        "bq": w(ks[1], (1, H * D_K), H * D_K) * 0.1,
        "wk": w(ks[2], (D_MODEL, H * D_K), D_MODEL),
        "bk": w(ks[3], (1, H * D_K), H * D_K) * 0.1,
        "wv": w(ks[4], (D_MODEL, H * D_V), D_MODEL),
        "bv": w(ks[5], (1, H * D_V), H * D_V) * 0.1,
        "wo": w(ks[6], (H * D_V, D_MODEL), H * D_V),
        "bo": w(ks[7], (1, D_MODEL), D_MODEL) * 0.1,
        "w1": w(ks[8], (D_MODEL, DIM_FF), D_MODEL),
        "b1": w(ks[9], (1, DIM_FF), DIM_FF) * 0.1,
        "w2": w(ks[10], (DIM_FF, D_MODEL), DIM_FF),
        "b2": w(ks[11], (1, D_MODEL), D_MODEL) * 0.1,
    }
    return params


if __name__ == "__main__":
    root = jax.random.PRNGKey(0)
    k_x, k_p = jax.random.split(root)
    E = jax.random.normal(k_x, (BATCH, SEQ, D_MODEL), jnp.float32)
    params = init_params(k_p)

    # TODO(synk): optional attention `mask` argument not implemented (mask=None path only).
    out = encoder_block(E, params)
    jax.block_until_ready(out)
    assert out.shape == (BATCH, SEQ, D_MODEL)
    assert jnp.all(jnp.isfinite(out))

    # tight tolerance check against pure-JAX reference (exact softmax division)
    with jax.default_matmul_precision("highest"):
        ref = encoder_block_ref(E, params)
    max_err = float(jnp.max(jnp.abs(out - ref)))
    assert max_err < 5e-3, f"kernel/reference mismatch: max_abs_err={max_err}"

    print("KERNEL_OK")
</pallas_src>

<mosaic_0001>
module attributes {stable_mosaic.version = 11 : i64} {
  func.func @encoder_block_kernel(%arg0: i32, %arg1: memref<16x32xf32, #tpu.memory_space<vmem>>, %arg2: memref<96x128xf32, #tpu.memory_space<vmem>>, %arg3: memref<8x128xf32, #tpu.memory_space<vmem>>, %arg4: memref<16x32xf32, #tpu.memory_space<vmem>>) attributes {dimension_semantics = [#tpu.dimension_semantics<arbitrary>], iteration_bounds = array<i64: 1>, scalar_prefetch = 0 : i64, scratch_operands = 0 : i64, tpu.core_type = #tpu.core_type<tc>, window_params = [{pipeline_mode = #tpu.pipeline_mode<synchronous>, transform_indices = @transform_0, window_bounds = array<i64: 16, 32>}, {pipeline_mode = #tpu.pipeline_mode<synchronous>, transform_indices = @transform_1, window_bounds = array<i64: 96, 128>}, {pipeline_mode = #tpu.pipeline_mode<synchronous>, transform_indices = @transform_2, window_bounds = array<i64: 8, 128>}, {pipeline_mode = #tpu.pipeline_mode<synchronous>, transform_indices = @transform_3, window_bounds = array<i64: 16, 32>}]} {
    %c0 = arith.constant 0 : index
    %c0_0 = arith.constant 0 : index
    %0 = vector.load %arg1[%c0, %c0_0] : memref<16x32xf32, #tpu.memory_space<vmem>>, vector<16x32xf32>
    %c0_1 = arith.constant 0 : index
    %c0_2 = arith.constant 0 : index
    %1 = vector.load %arg2[%c0_1, %c0_2] : memref<96x128xf32, #tpu.memory_space<vmem>>, vector<96x128xf32>
    %c0_3 = arith.constant 0 : index
    %c0_4 = arith.constant 0 : index
    %2 = vector.load %arg3[%c0_3, %c0_4] : memref<8x128xf32, #tpu.memory_space<vmem>>, vector<8x128xf32>
    %3 = vector.extract_strided_slice %1 {offsets = [0, 0], sizes = [32, 96], strides = [1, 1]} : vector<96x128xf32> to vector<32x96xf32>
    %4 = vector.extract_strided_slice %1 {offsets = [0, 96], sizes = [32, 32], strides = [1, 1]} : vector<96x128xf32> to vector<32x32xf32>
    %5 = vector.extract_strided_slice %1 {offsets = [32, 32], sizes = [32, 64], strides = [1, 1]} : vector<96x128xf32> to vector<32x64xf32>
    %6 = vector.extract_strided_slice %1 {offsets = [32, 0], sizes = [64, 32], strides = [1, 1]} : vector<96x128xf32> to vector<64x32xf32>
    %7 = vector.extract_strided_slice %2 {offsets = [0, 0], sizes = [1, 96], strides = [1, 1]} : vector<8x128xf32> to vector<1x96xf32>
    %8 = vector.extract_strided_slice %2 {offsets = [0, 96], sizes = [1, 32], strides = [1, 1]} : vector<8x128xf32> to vector<1x32xf32>
    %9 = vector.extract_strided_slice %2 {offsets = [1, 0], sizes = [1, 64], strides = [1, 1]} : vector<8x128xf32> to vector<1x64xf32>
    %10 = vector.extract_strided_slice %2 {offsets = [1, 64], sizes = [1, 32], strides = [1, 1]} : vector<8x128xf32> to vector<1x32xf32>
    %cst = arith.constant dense<0.000000e+00> : vector<16x96xf32>
    %11 = tpu.matmul %0, %3, %cst {dimension_numbers = #tpu.dot_dimension_numbers<[1], [0], [0], [1], [0, 0, 1, 1], [], []>} : vector<16x32xf32>, vector<32x96xf32>, vector<16x96xf32> -> vector<16x96xf32>
    %12 = vector.broadcast %7 : vector<1x96xf32> to vector<16x96xf32>
    %13 = arith.addf %11, %12 : vector<16x96xf32>
    %14 = vector.extract_strided_slice %13 {offsets = [0, 0], sizes = [16, 32], strides = [1, 1]} : vector<16x96xf32> to vector<16x32xf32>
    %15 = vector.shape_cast %14 : vector<16x32xf32> to vector<2x8x32xf32>
    %16 = vector.extract_strided_slice %13 {offsets = [0, 32], sizes = [16, 32], strides = [1, 1]} : vector<16x96xf32> to vector<16x32xf32>
    %17 = vector.shape_cast %16 : vector<16x32xf32> to vector<2x8x32xf32>
    %18 = vector.extract_strided_slice %13 {offsets = [0, 64], sizes = [16, 32], strides = [1, 1]} : vector<16x96xf32> to vector<16x32xf32>
    %19 = vector.shape_cast %18 : vector<16x32xf32> to vector<2x8x32xf32>
    %20 = vector.extract_strided_slice %15 {offsets = [0, 0, 0], sizes = [2, 8, 8], strides = [1, 1, 1]} : vector<2x8x32xf32> to vector<2x8x8xf32>
    %21 = vector.extract_strided_slice %17 {offsets = [0, 0, 0], sizes = [2, 8, 8], strides = [1, 1, 1]} : vector<2x8x32xf32> to vector<2x8x8xf32>
    %22 = vector.extract_strided_slice %19 {offsets = [0, 0, 0], sizes = [2, 8, 8], strides = [1, 1, 1]} : vector<2x8x32xf32> to vector<2x8x8xf32>
    "tpu.trace_start"() <{level = 10 : i32, message = "bqd,bkd->bqk"}> : () -> ()
    %cst_5 = arith.constant dense<0.000000e+00> : vector<2x8x8xf32>
    %23 = tpu.matmul %20, %21, %cst_5 {dimension_numbers = #tpu.dot_dimension_numbers<[2], [2], [1], [1], [0, 0, 0, 1, 1, 1], [0], [0]>} : vector<2x8x8xf32>, vector<2x8x8xf32>, vector<2x8x8xf32> -> vector<2x8x8xf32>
    "tpu.trace_stop"() : () -> ()
    %cst_6 = arith.constant 0.353553385 : f32
    %24 = vector.broadcast %cst_6 : f32 to vector<2x8x8xf32>
    %25 = arith.mulf %23, %24 : vector<2x8x8xf32>
    %cst_7 = arith.constant dense<0xFF800000> : vector<2x8xf32>
    %26 = vector.multi_reduction <maximumf>, %25, %cst_7 [2] : vector<2x8x8xf32> to vector<2x8xf32>
    %27 = vector.shape_cast %26 : vector<2x8xf32> to vector<2x8x1xf32>
    %28 = vector.broadcast %27 : vector<2x8x1xf32> to vector<2x8x8xf32>
    %29 = arith.subf %25, %28 : vector<2x8x8xf32>
    %30 = math.exp %29 : vector<2x8x8xf32>
    %cst_8 = arith.constant dense<0.000000e+00> : vector<2x8xf32>
    %31 = vector.multi_reduction <add>, %30, %cst_8 [2] : vector<2x8x8xf32> to vector<2x8xf32>
    %32 = vector.shape_cast %31 : vector<2x8xf32> to vector<2x8x1xf32>
    %33 = vector.broadcast %32 : vector<2x8x1xf32> to vector<2x8x8xf32>
    %34 = arith.divf %30, %33 : vector<2x8x8xf32>
    "tpu.trace_start"() <{level = 10 : i32, message = "bqk,bkd->bqd"}> : () -> ()
    %cst_9 = arith.constant dense<0.000000e+00> : vector<2x8x8xf32>
    %35 = tpu.matmul %34, %22, %cst_9 {dimension_numbers = #tpu.dot_dimension_numbers<[2], [1], [1], [2], [0, 0, 0, 1, 1, 2], [0], [0]>} : vector<2x8x8xf32>, vector<2x8x8xf32>, vector<2x8x8xf32> -> vector<2x8x8xf32>
    "tpu.trace_stop"() : () -> ()
    %36 = vector.extract_strided_slice %15 {offsets = [0, 0, 8], sizes = [2, 8, 8], strides = [1, 1, 1]} : vector<2x8x32xf32> to vector<2x8x8xf32>
    %37 = vector.extract_strided_slice %17 {offsets = [0, 0, 8], sizes = [2, 8, 8], strides = [1, 1, 1]} : vector<2x8x32xf32> to vector<2x8x8xf32>
    %38 = vector.extract_strided_slice %19 {offsets = [0, 0, 8], sizes = [2, 8, 8], strides = [1, 1, 1]} : vector<2x8x32xf32> to vector<2x8x8xf32>
    "tpu.trace_start"() <{level = 10 : i32, message = "bqd,bkd->bqk"}> : () -> ()
    %cst_10 = arith.constant dense<0.000000e+00> : vector<2x8x8xf32>
    %39 = tpu.matmul %36, %37, %cst_10 {dimension_numbers = #tpu.dot_dimension_numbers<[2], [2], [1], [1], [0, 0, 0, 1, 1, 1], [0], [0]>} : vector<2x8x8xf32>, vector<2x8x8xf32>, vector<2x8x8xf32> -> vector<2x8x8xf32>
    "tpu.trace_stop"() : () -> ()
    %cst_11 = arith.constant 0.353553385 : f32
    %40 = vector.broadcast %cst_11 : f32 to vector<2x8x8xf32>
    %41 = arith.mulf %39, %40 : vector<2x8x8xf32>
    %cst_12 = arith.constant dense<0xFF800000> : vector<2x8xf32>
    %42 = vector.multi_reduction <maximumf>, %41, %cst_12 [2] : vector<2x8x8xf32> to vector<2x8xf32>
    %43 = vector.shape_cast %42 : vector<2x8xf32> to vector<2x8x1xf32>
    %44 = vector.broadcast %43 : vector<2x8x1xf32> to vector<2x8x8xf32>
    %45 = arith.subf %41, %44 : vector<2x8x8xf32>
    %46 = math.exp %45 : vector<2x8x8xf32>
    %cst_13 = arith.constant dense<0.000000e+00> : vector<2x8xf32>
    %47 = vector.multi_reduction <add>, %46, %cst_13 [2] : vector<2x8x8xf32> to vector<2x8xf32>
    %48 = vector.shape_cast %47 : vector<2x8xf32> to vector<2x8x1xf32>
    %49 = vector.broadcast %48 : vector<2x8x1xf32> to vector<2x8x8xf32>
    %50 = arith.divf %46, %49 : vector<2x8x8xf32>
    "tpu.trace_start"() <{level = 10 : i32, message = "bqk,bkd->bqd"}> : () -> ()
    %cst_14 = arith.constant dense<0.000000e+00> : vector<2x8x8xf32>
    %51 = tpu.matmul %50, %38, %cst_14 {dimension_numbers = #tpu.dot_dimension_numbers<[2], [1], [1], [2], [0, 0, 0, 1, 1, 2], [0], [0]>} : vector<2x8x8xf32>, vector<2x8x8xf32>, vector<2x8x8xf32> -> vector<2x8x8xf32>
    "tpu.trace_stop"() : () -> ()
    %52 = vector.extract_strided_slice %15 {offsets = [0, 0, 16], sizes = [2, 8, 8], strides = [1, 1, 1]} : vector<2x8x32xf32> to vector<2x8x8xf32>
    %53 = vector.extract_strided_slice %17 {offsets = [0, 0, 16], sizes = [2, 8, 8], strides = [1, 1, 1]} : vector<2x8x32xf32> to vector<2x8x8xf32>
    %54 = vector.extract_strided_slice %19 {offsets = [0, 0, 16], sizes = [2, 8, 8], strides = [1, 1, 1]} : vector<2x8x32xf32> to vector<2x8x8xf32>
    "tpu.trace_start"() <{level = 10 : i32, message = "bqd,bkd->bqk"}> : () -> ()
    %cst_15 = arith.constant dense<0.000000e+00> : vector<2x8x8xf32>
    %55 = tpu.matmul %52, %53, %cst_15 {dimension_numbers = #tpu.dot_dimension_numbers<[2], [2], [1], [1], [0, 0, 0, 1, 1, 1], [0], [0]>} : vector<2x8x8xf32>, vector<2x8x8xf32>, vector<2x8x8xf32> -> vector<2x8x8xf32>
    "tpu.trace_stop"() : () -> ()
    %cst_16 = arith.constant 0.353553385 : f32
    %56 = vector.broadcast %cst_16 : f32 to vector<2x8x8xf32>
    %57 = arith.mulf %55, %56 : vector<2x8x8xf32>
    %cst_17 = arith.constant dense<0xFF800000> : vector<2x8xf32>
    %58 = vector.multi_reduction <maximumf>, %57, %cst_17 [2] : vector<2x8x8xf32> to vector<2x8xf32>
    %59 = vector.shape_cast %58 : vector<2x8xf32> to vector<2x8x1xf32>
    %60 = vector.broadcast %59 : vector<2x8x1xf32> to vector<2x8x8xf32>
    %61 = arith.subf %57, %60 : vector<2x8x8xf32>
    %62 = math.exp %61 : vector<2x8x8xf32>
    %cst_18 = arith.constant dense<0.000000e+00> : vector<2x8xf32>
    %63 = vector.multi_reduction <add>, %62, %cst_18 [2] : vector<2x8x8xf32> to vector<2x8xf32>
    %64 = vector.shape_cast %63 : vector<2x8xf32> to vector<2x8x1xf32>
    %65 = vector.broadcast %64 : vector<2x8x1xf32> to vector<2x8x8xf32>
    %66 = arith.divf %62, %65 : vector<2x8x8xf32>
    "tpu.trace_start"() <{level = 10 : i32, message = "bqk,bkd->bqd"}> : () -> ()
    %cst_19 = arith.constant dense<0.000000e+00> : vector<2x8x8xf32>
    %67 = tpu.matmul %66, %54, %cst_19 {dimension_numbers = #tpu.dot_dimension_numbers<[2], [1], [1], [2], [0, 0, 0, 1, 1, 2], [0], [0]>} : vector<2x8x8xf32>, vector<2x8x8xf32>, vector<2x8x8xf32> -> vector<2x8x8xf32>
    "tpu.trace_stop"() : () -> ()
    %68 = vector.extract_strided_slice %15 {offsets = [0, 0, 24], sizes = [2, 8, 8], strides = [1, 1, 1]} : vector<2x8x32xf32> to vector<2x8x8xf32>
    %69 = vector.extract_strided_slice %17 {offsets = [0, 0, 24], sizes = [2, 8, 8], strides = [1, 1, 1]} : vector<2x8x32xf32> to vector<2x8x8xf32>
    %70 = vector.extract_strided_slice %19 {offsets = [0, 0, 24], sizes = [2, 8, 8], strides = [1, 1, 1]} : vector<2x8x32xf32> to vector<2x8x8xf32>
    "tpu.trace_start"() <{level = 10 : i32, message = "bqd,bkd->bqk"}> : () -> ()
    %cst_20 = arith.constant dense<0.000000e+00> : vector<2x8x8xf32>
    %71 = tpu.matmul %68, %69, %cst_20 {dimension_numbers = #tpu.dot_dimension_numbers<[2], [2], [1], [1], [0, 0, 0, 1, 1, 1], [0], [0]>} : vector<2x8x8xf32>, vector<2x8x8xf32>, vector<2x8x8xf32> -> vector<2x8x8xf32>
    "tpu.trace_stop"() : () -> ()
    %cst_21 = arith.constant 0.353553385 : f32
    %72 = vector.broadcast %cst_21 : f32 to vector<2x8x8xf32>
    %73 = arith.mulf %71, %72 : vector<2x8x8xf32>
    %cst_22 = arith.constant dense<0xFF800000> : vector<2x8xf32>
    %74 = vector.multi_reduction <maximumf>, %73, %cst_22 [2] : vector<2x8x8xf32> to vector<2x8xf32>
    %75 = vector.shape_cast %74 : vector<2x8xf32> to vector<2x8x1xf32>
    %76 = vector.broadcast %75 : vector<2x8x1xf32> to vector<2x8x8xf32>
    %77 = arith.subf %73, %76 : vector<2x8x8xf32>
    %78 = math.exp %77 : vector<2x8x8xf32>
    %cst_23 = arith.constant dense<0.000000e+00> : vector<2x8xf32>
    %79 = vector.multi_reduction <add>, %78, %cst_23 [2] : vector<2x8x8xf32> to vector<2x8xf32>
    %80 = vector.shape_cast %79 : vector<2x8xf32> to vector<2x8x1xf32>
    %81 = vector.broadcast %80 : vector<2x8x1xf32> to vector<2x8x8xf32>
    %82 = arith.divf %78, %81 : vector<2x8x8xf32>
    "tpu.trace_start"() <{level = 10 : i32, message = "bqk,bkd->bqd"}> : () -> ()
    %cst_24 = arith.constant dense<0.000000e+00> : vector<2x8x8xf32>
    %83 = tpu.matmul %82, %70, %cst_24 {dimension_numbers = #tpu.dot_dimension_numbers<[2], [1], [1], [2], [0, 0, 0, 1, 1, 2], [0], [0]>} : vector<2x8x8xf32>, vector<2x8x8xf32>, vector<2x8x8xf32> -> vector<2x8x8xf32>
    "tpu.trace_stop"() : () -> ()
    %84 = tpu.concatenate %35, %51, %67, %83 in 2 : vector<2x8x8xf32>, vector<2x8x8xf32>, vector<2x8x8xf32>, vector<2x8x8xf32> -> vector<2x8x32xf32>
    %85 = vector.shape_cast %84 : vector<2x8x32xf32> to vector<16x32xf32>
    %cst_25 = arith.constant dense<0.000000e+00> : vector<16x32xf32>
    %86 = tpu.matmul %85, %4, %cst_25 {dimension_numbers = #tpu.dot_dimension_numbers<[1], [0], [0], [1], [0, 0, 1, 1], [], []>} : vector<16x32xf32>, vector<32x32xf32>, vector<16x32xf32> -> vector<16x32xf32>
    %87 = vector.broadcast %8 : vector<1x32xf32> to vector<16x32xf32>
    %88 = arith.addf %86, %87 : vector<16x32xf32>
    %89 = arith.addf %88, %0 : vector<16x32xf32>
    %cst_26 = arith.constant dense<0.000000e+00> : vector<16xf32>
    %90 = vector.multi_reduction <add>, %89, %cst_26 [1] : vector<16x32xf32> to vector<16xf32>
    %91 = vector.shape_cast %90 : vector<16xf32> to vector<16x1xf32>
    %cst_27 = arith.constant 3.200000e+01 : f32
    %92 = vector.broadcast %cst_27 : f32 to vector<16x1xf32>
    %93 = arith.divf %91, %92 : vector<16x1xf32>
    %94 = vector.broadcast %93 : vector<16x1xf32> to vector<16x32xf32>
    %95 = arith.subf %89, %94 : vector<16x32xf32>
    %96 = arith.mulf %95, %95 : vector<16x32xf32>
    %cst_28 = arith.constant dense<0.000000e+00> : vector<16xf32>
    %97 = vector.multi_reduction <add>, %96, %cst_28 [1] : vector<16x32xf32> to vector<16xf32>
    %98 = vector.shape_cast %97 : vector<16xf32> to vector<16x1xf32>
    %cst_29 = arith.constant 3.200000e+01 : f32
    %99 = vector.broadcast %cst_29 : f32 to vector<16x1xf32>
    %100 = arith.divf %98, %99 : vector<16x1xf32>
    %101 = vector.broadcast %93 : vector<16x1xf32> to vector<16x32xf32>
    %102 = arith.subf %89, %101 : vector<16x32xf32>
    %cst_30 = arith.constant 9.99999974E-6 : f32
    %103 = vector.broadcast %cst_30 : f32 to vector<16x1xf32>
    %104 = arith.addf %100, %103 : vector<16x1xf32>
    %105 = math.rsqrt %104 : vector<16x1xf32>
    %106 = vector.broadcast %105 : vector<16x1xf32> to vector<16x32xf32>
    %107 = arith.mulf %102, %106 : vector<16x32xf32>
    %cst_31 = arith.constant dense<0.000000e+00> : vector<16x64xf32>
    %108 = tpu.matmul %107, %5, %cst_31 {dimension_numbers = #tpu.dot_dimension_numbers<[1], [0], [0], [1], [0, 0, 1, 1], [], []>} : vector<16x32xf32>, vector<32x64xf32>, vector<16x64xf32> -> vector<16x64xf32>
    %109 = vector.broadcast %9 : vector<1x64xf32> to vector<16x64xf32>
    %110 = arith.addf %108, %109 : vector<16x64xf32>
    %cst_32 = arith.constant 0.000000e+00 : f32
    %111 = vector.broadcast %cst_32 : f32 to vector<16x64xf32>
    %112 = arith.maximumf %110, %111 : vector<16x64xf32>
    %cst_33 = arith.constant dense<0.000000e+00> : vector<16x32xf32>
    %113 = tpu.matmul %112, %6, %cst_33 {dimension_numbers = #tpu.dot_dimension_numbers<[1], [0], [0], [1], [0, 0, 1, 1], [], []>} : vector<16x64xf32>, vector<64x32xf32>, vector<16x32xf32> -> vector<16x32xf32>
    %114 = vector.broadcast %10 : vector<1x32xf32> to vector<16x32xf32>
    %115 = arith.addf %113, %114 : vector<16x32xf32>
    %116 = arith.addf %115, %107 : vector<16x32xf32>
    %cst_34 = arith.constant dense<0.000000e+00> : vector<16xf32>
    %117 = vector.multi_reduction <add>, %116, %cst_34 [1] : vector<16x32xf32> to vector<16xf32>
    %118 = vector.shape_cast %117 : vector<16xf32> to vector<16x1xf32>
    %cst_35 = arith.constant 3.200000e+01 : f32
    %119 = vector.broadcast %cst_35 : f32 to vector<16x1xf32>
    %120 = arith.divf %118, %119 : vector<16x1xf32>
    %121 = vector.broadcast %120 : vector<16x1xf32> to vector<16x32xf32>
    %122 = arith.subf %116, %121 : vector<16x32xf32>
    %123 = arith.mulf %122, %122 : vector<16x32xf32>
    %cst_36 = arith.constant dense<0.000000e+00> : vector<16xf32>
    %124 = vector.multi_reduction <add>, %123, %cst_36 [1] : vector<16x32xf32> to vector<16xf32>
    %125 = vector.shape_cast %124 : vector<16xf32> to vector<16x1xf32>
    %cst_37 = arith.constant 3.200000e+01 : f32
    %126 = vector.broadcast %cst_37 : f32 to vector<16x1xf32>
    %127 = arith.divf %125, %126 : vector<16x1xf32>
    %128 = vector.broadcast %120 : vector<16x1xf32> to vector<16x32xf32>
    %129 = arith.subf %116, %128 : vector<16x32xf32>
    %cst_38 = arith.constant 9.99999974E-6 : f32
    %130 = vector.broadcast %cst_38 : f32 to vector<16x1xf32>
    %131 = arith.addf %127, %130 : vector<16x1xf32>
    %132 = math.rsqrt %131 : vector<16x1xf32>
    %133 = vector.broadcast %132 : vector<16x1xf32> to vector<16x32xf32>
    %134 = arith.mulf %129, %133 : vector<16x32xf32>
    %c0_39 = arith.constant 0 : index
    %c0_40 = arith.constant 0 : index
    %135 = vector.load %arg4[%c0_39, %c0_40] : memref<16x32xf32, #tpu.memory_space<vmem>>, vector<16x32xf32>
    tpu.vector_store %arg4[%c0_39, %c0_40], %134 {strides = array<i32>} : memref<16x32xf32, #tpu.memory_space<vmem>>, vector<16x32xf32>,
    return
  }
  func.func @transform_0(%arg0: i32) -> (i32, i32) {
    %c0_i32 = arith.constant 0 : i32
    %c0_i32_0 = arith.constant 0 : i32
    %c0_i32_1 = arith.constant 0 : i32
    return %c0_i32, %c0_i32_0 : i32, i32
  }
  func.func @transform_1(%arg0: i32) -> (i32, i32) {
    %c0_i32 = arith.constant 0 : i32
    %c0_i32_0 = arith.constant 0 : i32
    %c0_i32_1 = arith.constant 0 : i32
    return %c0_i32, %c0_i32_0 : i32, i32
  }
  func.func @transform_2(%arg0: i32) -> (i32, i32) {
    %c0_i32 = arith.constant 0 : i32
    %c0_i32_0 = arith.constant 0 : i32
    %c0_i32_1 = arith.constant 0 : i32
    return %c0_i32, %c0_i32_0 : i32, i32
  }
  func.func @transform_3(%arg0: i32) -> (i32, i32) {
    %c0_i32 = arith.constant 0 : i32
    %c0_i32_0 = arith.constant 0 : i32
    %c0_i32_1 = arith.constant 0 : i32
    return %c0_i32, %c0_i32_0 : i32, i32
  }
}

</mosaic_0001>

<bundles_post_ra>
// kernel: tpu_custom_call.1
= control target key start
LH: loop header
LB: loop body
LE: loop exit
PB: predicated region body
PF: predicated region fallthrough
CT: control target
= control target key end

     0   :  { %8 = vsyncpa [#allocation3], 0  ;;  %s2625_s0 = inlined_call_operand.hbm [shape: f32[16,32], index: 0, kind: input, shape index: {}]   ;;  %s2626_s1 = inlined_call_operand.hbm [shape: f32[96,128], index: 1, kind: input, shape index: {}]   ;;  %s2627_s2 = inlined_call_operand.hbm [shape: f32[8,128], index: 2, kind: input, shape index: {}]   ;;  %s2628_s3 = inlined_call_operand.hbm [shape: f32[16,32], index: 3, kind: output, shape index: {}]  }
   0x1   :  { %9 = vsyncpa [#allocation6], 0 }
   0x2   :  { %10 = vsyncpa [#allocation4], 0  ;;  %s2321_s12 = smov [#allocation5]   ;;  %s2322_s14 = smov [#allocation2]  }
   0x3   :  { %s28_s13 = sshll.u32 %s2321_s12, 4  ;;  %s16_s15 = sshll.u32 %s2322_s14, 4  ;;  %s29_s13 = int_to_ptr.vmem [resolvable:$true] %s28_s13  ;;  %s2363_s15 = int_to_ptr.vmem [resolvable:$true] %s16_s15 }
   0x4   :  { %s2227_s18 = scalar_lea.hbm %s2626_s1, 1536 }
   0x5   :  { %p2228_p0 = scmp.ne.s32.totalorder %s2626_s1, %s2227_s18  ;;  %p2231_p1 = scmp.lt.u32.totalorder %s2227_s18, %s2626_s1 }
   0x7   :  { %p2233_p2 = pnand %p2231_p1, %p2228_p0 }
   0x9   :  { %2236 = shalt.err (!%p2233_p2)
}
   0xa   :  { %s2237_s23 = scalar_lea.vmem %s29_s13, 1536  ;;  %p2242_p4 = scmp.lt.s32.totalorder %s29_s13, %s29_s13 }
   0xb   :  { %p2238_p3 = scmp.ne.s32.totalorder %s29_s13, %s2237_s23  ;;  %p2243_p5 = scmp.lt.s32.totalorder %s2237_s23, %s2237_s23 }
   0xd   :  { %p2244_p6 = por %p2243_p5, %p2242_p4 }
   0xf   :  { %p2245_p7 = pnand %p2244_p6, %p2238_p3 }
  0x11   :  { %2248 = shalt.err (!%p2245_p7)
}
  0x12   :  { %s2323_s24 = smov 128   ;;  %s2324_s25 = smov 8  }
  0x13   :  { %34 = dma.hbm_to_vmem [thread:$0]  %s2626_s1, 1536, %s29_s13, [#allocation6], %s2323_s24, %s2323_s24, %s2324_s25  }
  0x14   :  { %s2249_s30 = scalar_lea.hbm %s2625_s0, 256 }
  0x15   :  { %p2250_p8 = scmp.ne.s32.totalorder %s2625_s0, %s2249_s30  ;;  %p2253_p9 = scmp.lt.u32.totalorder %s2249_s30, %s2625_s0 }
  0x17   :  { %p2255_p10 = pnand %p2253_p9, %p2250_p8 }
  0x19   :  { %2258 = shalt.err (!%p2255_p10)
}
  0x1a   :  { %s2259_s8 = scalar_lea.vmem %s2363_s15, 256  ;;  %p2264_p12 = scmp.lt.s32.totalorder %s2363_s15, %s2363_s15 }
  0x1b   :  { %p2260_p11 = scmp.ne.s32.totalorder %s2363_s15, %s2259_s8  ;;  %p2265_p13 = scmp.lt.s32.totalorder %s2259_s8, %s2259_s8 }
  0x1d   :  { %p2266_p0 = por %p2265_p13, %p2264_p12 }
  0x1f   :  { %p2267_p1 = pnand %p2266_p0, %p2260_p11 }
  0x21   :  { %2270 = shalt.err (!%p2267_p1)
}
  0x22   :  { %22 = dma.hbm_to_vmem [thread:$0]  %s2625_s0, 256, %s2363_s15, [#allocation3], %s2323_s24, %s2323_s24, %s2324_s25  }
  0x23   :  { %s2325_s10 = smov [#allocation7]   ;;  %s2271_s14 = scalar_lea.hbm %s2627_s2, 128 }
  0x24   :  { %s41_s11 = sshll.u32 %s2325_s10, 4  ;;  %p2272_p2 = scmp.ne.s32.totalorder %s2627_s2, %s2271_s14  ;;  %s42_s11 = int_to_ptr.vmem [resolvable:$true] %s41_s11 }
  0x25   :  { %p2275_p3 = scmp.lt.u32.totalorder %s2271_s14, %s2627_s2 }
  0x27   :  { %p2277_p4 = pnand %p2275_p3, %p2272_p2 }
  0x29   :  { %2280 = shalt.err (!%p2277_p4)
}
  0x2a   :  { %s2281_s20 = scalar_lea.vmem %s42_s11, 128  ;;  %p2286_p6 = scmp.lt.s32.totalorder %s42_s11, %s42_s11 }
  0x2b   :  { %p2282_p5 = scmp.ne.s32.totalorder %s42_s11, %s2281_s20  ;;  %p2287_p7 = scmp.lt.s32.totalorder %s2281_s20, %s2281_s20 }
  0x2d   :  { %p2288_p8 = por %p2287_p7, %p2286_p6 }
  0x2f   :  { %p2289_p9 = pnand %p2288_p8, %p2282_p5 }
  0x31   :  { %2292 = shalt.err (!%p2289_p9)
}
  0x32   :  { %44 = dma.hbm_to_vmem [thread:$0]  %s2627_s2, 128, %s42_s11, [#allocation6]  }
  0x33   :  { %2315 = dma.done.wait [#allocation3], 256  }
  0x34   :  { %2316 = vsyncadd [#allocation3], 4294967040 }
  0x35   :  { %2317 = dma.done.wait [#allocation6], 1664  }
  0x36   :  { %2318 = vsyncadd [#allocation6], 4294965632  ;;  %vm73_vm0 = vcmask 261120   ;;  %v2412_v0 = vld [vmem:[#allocation5] sm:$0xff]  ;;  %v2414_v1 = vld [vmem:[#allocation5 + $0x8] sm:$0xff]  ;;  %v2326_v9 = vmov 0.0   ;;  %v69_v10 = vlaneseq }
  0x37   :  { %v2416_v2 = vld [vmem:[#allocation5 + $0x10] sm:$0xff]  ;;  %v2167_v3 = vpack.i.bf16 %v2414_v1, %v2412_v0  ;;  %v2105_v4 = vpack.c.bf16 %v2414_v1, %v2412_v0  ;;  %v2422_v5 = vld [vmem:[#allocation5 + $0x18] sm:$0xff]  ;;  %1994 = vmatprep.subr.mxu0 %v2326_v9  ;;  %vm2327_vm1 = vmmov 0   ;;  %v2443_v13 = vld [vmem:[#allocation7] sm:$0xff]  ;;  %s2328_s2 = smov 96   ;;  %vm158_vm2 = vcmask 64512  }
  0x38   :  { %v2424_v6 = vld [vmem:[#allocation2] sm:$0xff]  ;;  %v2109_v7 = vpack.c.bf16 %v2422_v5, %v2416_v2  ;;  %v2430_v8 = vld [vmem:[#allocation2 + $0x8] sm:$0xff]  ;;  %v2436_v11 = vshrl.u32 %v69_v10, 7  ;;  %1996 = vmatprep.mubr.msk.f32.mxu0 %vm2327_vm1, %v2326_v9  ;;  %s2329_s21 = smov 64   ;;  %s2330_s22 = smov 88   ;;  %vm1511_vm3 = vcmask 195584  }
  0x39   :  { %1981 = vmatprep.mubr.msk.f32.mxu1 %vm73_vm0, %v2424_v6  ;;  %2106 = vmatprep.subr.bf16.mxu1 %v2105_v4  ;;  %s2331_s23 = smov 120   ;;  %s2332_s26 = smov 56   ;;  %vm1508_vm4 = vcmask 130048   ;;  %vm1751_vm5 = vcmask 523264  }
  0x3a   :  { %2108 = vmatpush3.bf16.msra.mxu1 %v2105_v4  ;;  %v71_v12 = vsub.s32 0, %v2436_v11  ;;  %s2333_s27 = smov 80   ;;  %s2334_s28 = smov 112  }
  0x3b   :  { %2110 = vmatprep.subr.bf16.mxu1 %v2109_v7  ;;  %s2335_s29 = smov 48   ;;  %s2336_s30 = smov 72  }
  0x3c   :  { %v2446_v14 = vrot.slane %v2443_v13, %v71_v12  ;;  %s2337_s4 = smov 104   ;;  %s2338_s5 = smov 40  }
  0x3d   :  { %s2339_s6 = smov 32   ;;  %s2340_s7 = smov 16  }
  0x3e   :  { %2112 = vmatpush3.bf16.msra.mxu1 %v2109_v7  ;;  %s2341_s8 = smov 24   ;;  %s2342_s1 = smov [#allocation8]  }
  0x3f   :  { %1984 = vmatprep.subr.mxu1 %v2326_v9  ;;  %s1868_s9 = sshll.u32 %s2342_s1, 4  ;;  %s1869_s9 = int_to_ptr.vmem [resolvable:$true] %s1868_s9 }
  0x40   :  { %s2293_s10 = scalar_lea.vmem %s1869_s9, 256  ;;  %p2298_p11 = scmp.lt.s32.totalorder %s1869_s9, %s1869_s9 }
  0x41   :  { %1982 = vmatmul.mubr.msk.f32.vlgmr.msra.gmra.mrb[0].mxu1 %vm73_vm0, %v2430_v8  ;;  %p2294_p10 = scmp.ne.s32.totalorder %s1869_s9, %s2293_s10  ;;  %p2299_p12 = scmp.lt.s32.totalorder %s2293_s10, %s2293_s10 }
  0x42   :  { %1986 = vmatprep.mubr.msk.f32.mxu1 %vm2327_vm1, %v2326_v9 }
  0x43   :  { %p2300_p13 = por %p2299_p12, %p2298_p11 }
  0x45   :  { %p2301_p0 = pnand %p2300_p13, %p2294_p10 }
 0x114   :  { %v1983_v15 = vpop.f32.mrb[0].mxu1 }
 0x115   :  { %v146_v16 = vpop.f32.mrb[1].mxu1  ;;  %v2454_v18 = vadd.f32 %v1983_v15, %v2446_v14 }
 0x116   :  { %v2449_v17 = vadd.f32 %v146_v16, %v2446_v14 }
 0x118   :  { %156 = vrot.lane.b32.xlu0 %v2449_v17, %s2328_s2 }
 0x11c   :  { %234 = vrot.lane.b32.xlu0 %v2454_v18, %s2328_s2 }
 0x18a   :  { %v157_v19 = vpop.permute.xlu0 %156 }
 0x18b   :  { %1985 = vmatpush3.xpose.msk.msra.mxu1 %vm158_vm2, %v157_v19 }
 0x18c   :  { %1989 = vmatprep.subr.mxu1 %v2326_v9 }
 0x18e   :  { %1987 = vmatmul.mubr.msk.f32.vlgmr.msra.gmra.mrb[2].mxu1 %vm158_vm2, %v2449_v17  ;;  %v235_v20 = vpop.permute.xlu0 %234 }
 0x18f   :  { %1990 = vmatpush3.xpose.msk.msra.mxu1 %vm158_vm2, %v235_v20  ;;  %1991 = vmatprep.mubr.msk.f32.mxu1 %vm2327_vm1, %v2326_v9 }
 0x190   :  { %1999 = vmatprep.subr.mxu1 %v2326_v9 }
 0x192   :  { %1992 = vmatmul.mubr.msk.f32.vlgmr.msra.gmra.mrb[4].mxu1 %vm158_vm2, %v2454_v18 }
 0x193   :  { %2001 = vmatprep.mubr.msk.f32.mxu1 %vm2327_vm1, %v2326_v9 }
 0x261   :  { %v229_v21 = vpop.f32.mrb[2].mxu1 }
 0x262   :  { %v310_v22 = vmul.f32 0.35355338, %v229_v21  ;;  %v1988_v23 = vpop.f32.mrb[3].mxu1 }
 0x264   :  { %v312_v24 = vsel %vm158_vm2, %v310_v22, -inf }
 0x265   :  { %313 = vmax.xlane.f32.xlu1 %v312_v24  ;;  %v306_v25 = vpop.f32.mrb[4].mxu1 }
 0x266   :  { %v311_v26 = vmul.f32 0.35355338, %v306_v25  ;;  %v1993_v27 = vpop.f32.mrb[5].mxu1 }
 0x268   :  { %v315_v28 = vsel %vm158_vm2, %v311_v26, -inf }
 0x269   :  { %316 = vmax.xlane.f32.xlu1 %v315_v28 }
 0x27a   :  { %334 = vrot.lane.b32.xlu1 %v2449_v17, %s2329_s21 }
 0x27e   :  { %410 = vrot.lane.b32.xlu1 %v2454_v18, %s2329_s21 }
 0x282   :  { %488 = vrot.lane.b32.xlu1 %v2449_v17, %s2330_s22 }
 0x286   :  { %566 = vrot.lane.b32.xlu1 %v2454_v18, %s2330_s22 }
 0x2f2   :  { %v314_v29 = vpop.xlane.xlu1 %313 }
 0x2f3   :  { %v318_v30 = vsub.f32 %v310_v22, %v314_v29 }
 0x2f5   :  { %v320_v31 = vmul.f32 1.442695, %v318_v30 }
 0x2f6   :  { %v317_v32 = vpop.xlane.xlu1 %316 }
 0x2f7   :  { %2187 = vpow2.f32 %v320_v31  ;;  %v319_v33 = vsub.f32 %v311_v26, %v317_v32 }
 0x2f9   :  { %v322_v34 = vmul.f32 1.442695, %v319_v33 }
 0x2fa   :  { %v335_v35 = vpop.permute.xlu1 %334 }
 0x2fb   :  { %2189 = vpow2.f32 %v322_v34  ;;  %1995 = vmatpush3.msra.mxu0 %v335_v35 }
 0x2fc   :  { %2004 = vmatprep.subr.mxu0 %v2326_v9 }
 0x2fe   :  { %v411_v36 = vpop.permute.xlu1 %410 }
 0x2ff   :  { %2000 = vmatpush3.msra.mxu1 %v411_v36 }
 0x300   :  { %2009 = vmatprep.subr.mxu1 %v2326_v9 }
 0x301   :  { %v2188_v37 = vpop.eup %2187 }
 0x302   :  { %v324_v38 = vsel %vm158_vm2, %v2188_v37, 0.0  ;;  %v489_v41 = vpop.permute.xlu1 %488 }
 0x303   :  { %325 = vadd.xlane.f32.xlu0 %v324_v38 }
 0x305   :  { %v2190_v39 = vpop.eup %2189 }
 0x306   :  { %v327_v40 = vsel %vm158_vm2, %v2190_v39, 0.0  ;;  %v567_v42 = vpop.permute.xlu1 %566 }
 0x307   :  { %328 = vadd.xlane.f32.xlu1 %v327_v40 }
 0x318   :  { %564 = vrot.lane.b32.xlu1 %v2454_v18, %s2331_s23 }
 0x319   :  { %486 = vrot.lane.b32.xlu0 %v2449_v17, %s2331_s23 }
 0x390   :  { %v326_v43 = vpop.xlane.xlu0 %325 }
 0x391   :  { %2191 = vrcp.f32 %v326_v43 }
 0x394   :  { %v329_v44 = vpop.xlane.xlu1 %328  ;;  %v487_v49 = vpop.permute.xlu0 %486 }
 0x395   :  { %2193 = vrcp.f32 %v329_v44 }
 0x398   :  { %v565_v50 = vpop.permute.xlu1 %564 }
 0x39b   :  { %v2192_v45 = vpop.eup %2191 }
 0x39c   :  { %v331_v46 = vmul.f32 %v2192_v45, %v2188_v37 }
 0x39e   :  { %1997 = vmatmul.mubr.msk.f32.vlgmr.msra.gmra.mrb[0].mxu0 %vm158_vm2, %v331_v46 }
 0x39f   :  { %v2194_v47 = vpop.eup %2193  ;;  %2005 = vmatpush3.xpose.msk.msra.mxu0 %vm158_vm2, %v489_v41  ;;  %2006 = vmatprep.mubr.msk.f32.mxu0 %vm2327_vm1, %v2326_v9 }
 0x3a0   :  { %v333_v48 = vmul.f32 %v2194_v47, %v2190_v39  ;;  %2014 = vmatprep.subr.mxu0 %v2326_v9 }
 0x3a2   :  { %2002 = vmatmul.mubr.msk.f32.vlgmr.msra.gmra.mrb[6].mxu1 %vm158_vm2, %v333_v48  ;;  %2007 = vmatmul.mubr.msk.f32.vlgmr.msra.gmra.mrb[2].mxu0 %vm158_vm2, %v487_v49 }
 0x3a3   :  { %2010 = vmatpush3.xpose.msk.msra.mxu1 %vm158_vm2, %v567_v42  ;;  %2011 = vmatprep.mubr.msk.f32.mxu1 %vm2327_vm1, %v2326_v9 }
 0x3a4   :  { %2019 = vmatprep.subr.mxu1 %v2326_v9  ;;  %2016 = vmatprep.mubr.msk.f32.mxu0 %vm2327_vm1, %v2326_v9 }
 0x3a6   :  { %2012 = vmatmul.mubr.msk.f32.vlgmr.msra.gmra.mrb[8].mxu1 %vm158_vm2, %v565_v50 }
 0x3a7   :  { %2021 = vmatprep.mubr.msk.f32.mxu1 %vm2327_vm1, %v2326_v9 }
 0x471   :  { %v2500_v51 = vpop.f32.mrb[0].mxu0 }
 0x472   :  { %v1998_v52 = vpop.f32.mrb[1].mxu0 }
 0x475   :  { %v2502_v53 = vpop.f32.mrb[6].mxu1  ;;  %v560_v54 = vpop.f32.mrb[2].mxu0 }
 0x476   :  { %v642_v55 = vmul.f32 0.35355338, %v560_v54  ;;  %v2003_v56 = vpop.f32.mrb[7].mxu1  ;;  %v2008_v57 = vpop.f32.mrb[3].mxu0 }
 0x478   :  { %v644_v58 = vsel %vm158_vm2, %v642_v55, -inf }
 0x479   :  { %v638_v59 = vpop.f32.mrb[8].mxu1  ;;  %645 = vmax.xlane.f32.xlu1 %v644_v58 }
 0x47a   :  { %v643_v60 = vmul.f32 0.35355338, %v638_v59  ;;  %v2013_v61 = vpop.f32.mrb[9].mxu1 }
 0x47c   :  { %v647_v62 = vsel %vm158_vm2, %v643_v60, -inf }
 0x47d   :  { %648 = vmax.xlane.f32.xlu0 %v647_v62 }
 0x48a   :  { %666 = vrot.lane.b32.xlu1 %v2449_v17, %s2332_s26 }
 0x48e   :  { %820 = vrot.lane.b32.xlu1 %v2449_v17, %s2333_s27 }
 0x492   :  { %898 = vrot.lane.b32.xlu1 %v2454_v18, %s2333_s27 }
 0x493   :  { %742 = vrot.lane.b32.xlu0 %v2454_v18, %s2332_s26 }
 0x497   :  { %818 = vrot.lane.b32.xlu0 %v2449_v17, %s2334_s28 }
 0x506   :  { %v646_v63 = vpop.xlane.xlu1 %645 }
 0x507   :  { %v650_v4 = vsub.f32 %v642_v55, %v646_v63 }
 0x509   :  { %v652_v7 = vmul.f32 1.442695, %v650_v4 }
 0x50a   :  { %v667_v10 = vpop.permute.xlu1 %666  ;;  %v649_v12 = vpop.xlane.xlu0 %648 }
 0x50b   :  { %2195 = vpow2.f32 %v652_v7  ;;  %v651_v15 = vsub.f32 %v643_v60, %v649_v12  ;;  %2015 = vmatpush3.msra.mxu0 %v667_v10 }
 0x50c   :  { %2024 = vmatprep.subr.mxu0 %v2326_v9 }
 0x50d   :  { %v654_v16 = vmul.f32 1.442695, %v651_v15 }
 0x50e   :  { %v743_v19 = vpop.permute.xlu0 %742  ;;  %v821_v24 = vpop.permute.xlu1 %820 }
 0x50f   :  { %2197 = vpow2.f32 %v654_v16  ;;  %2020 = vmatpush3.msra.mxu1 %v743_v19 }
 0x510   :  { %2029 = vmatprep.subr.mxu1 %v2326_v9 }
 0x512   :  { %v899_v25 = vpop.permute.xlu1 %898  ;;  %v819_v32 = vpop.permute.xlu0 %818 }
 0x515   :  { %v2196_v20 = vpop.eup %2195 }
 0x516   :  { %v656_v21 = vsel %vm158_vm2, %v2196_v20, 0.0 }
 0x517   :  { %657 = vadd.xlane.f32.xlu1 %v656_v21 }
 0x519   :  { %v2198_v22 = vpop.eup %2197 }
 0x51a   :  { %v659_v23 = vsel %vm158_vm2, %v2198_v22, 0.0 }
 0x51b   :  { %660 = vadd.xlane.f32.xlu1 %v659_v23 }
 0x52c   :  { %896 = vrot.lane.b32.xlu1 %v2454_v18, %s2334_s28 }
 0x5a4   :  { %v658_v26 = vpop.xlane.xlu1 %657 }
 0x5a5   :  { %2199 = vrcp.f32 %v658_v26 }
 0x5a8   :  { %v661_v27 = vpop.xlane.xlu1 %660 }
 0x5a9   :  { %2201 = vrcp.f32 %v661_v27 }
 0x5ac   :  { %v897_v33 = vpop.permute.xlu1 %896 }
 0x5af   :  { %v2200_v28 = vpop.eup %2199 }
 0x5b0   :  { %v663_v29 = vmul.f32 %v2200_v28, %v2196_v20 }
 0x5b2   :  { %2017 = vmatmul.mubr.msk.f32.vlgmr.msra.gmra.mrb[4].mxu0 %vm158_vm2, %v663_v29 }
 0x5b3   :  { %v2202_v30 = vpop.eup %2201  ;;  %2025 = vmatpush3.xpose.msk.msra.mxu0 %vm158_vm2, %v821_v24  ;;  %2026 = vmatprep.mubr.msk.f32.mxu0 %vm2327_vm1, %v2326_v9 }
 0x5b4   :  { %v665_v31 = vmul.f32 %v2202_v30, %v2198_v22  ;;  %2034 = vmatprep.subr.mxu0 %v2326_v9 }
 0x5b6   :  { %2022 = vmatmul.mubr.msk.f32.vlgmr.msra.gmra.mrb[10].mxu1 %vm158_vm2, %v665_v31  ;;  %2027 = vmatmul.mubr.msk.f32.vlgmr.msra.gmra.mrb[6].mxu0 %vm158_vm2, %v819_v32 }
 0x5b7   :  { %2030 = vmatpush3.xpose.msk.msra.mxu1 %vm158_vm2, %v899_v25  ;;  %2031 = vmatprep.mubr.msk.f32.mxu1 %vm2327_vm1, %v2326_v9 }
 0x5b8   :  { %2039 = vmatprep.subr.mxu1 %v2326_v9  ;;  %2036 = vmatprep.mubr.msk.f32.mxu0 %vm2327_vm1, %v2326_v9 }
 0x5ba   :  { %2032 = vmatmul.mubr.msk.f32.vlgmr.msra.gmra.mrb[12].mxu1 %vm158_vm2, %v897_v33 }
 0x5bb   :  { %2041 = vmatprep.mubr.msk.f32.mxu1 %vm2327_vm1, %v2326_v9 }
 0x685   :  { %v2532_v34 = vpop.f32.mrb[4].mxu0 }
 0x686   :  { %v2018_v35 = vpop.f32.mrb[5].mxu0 }
 0x689   :  { %v2534_v36 = vpop.f32.mrb[10].mxu1  ;;  %v892_v37 = vpop.f32.mrb[6].mxu0 }
 0x68a   :  { %v974_v38 = vmul.f32 0.35355338, %v892_v37  ;;  %v2023_v39 = vpop.f32.mrb[11].mxu1  ;;  %v2028_v40 = vpop.f32.mrb[7].mxu0 }
 0x68c   :  { %v976_v41 = vsel %vm158_vm2, %v974_v38, -inf }
 0x68d   :  { %v970_v42 = vpop.f32.mrb[12].mxu1  ;;  %977 = vmax.xlane.f32.xlu0 %v976_v41 }
 0x68e   :  { %v975_v43 = vmul.f32 0.35355338, %v970_v42  ;;  %v2033_v44 = vpop.f32.mrb[13].mxu1 }
 0x690   :  { %v979_v45 = vsel %vm158_vm2, %v975_v43, -inf }
 0x691   :  { %980 = vmax.xlane.f32.xlu1 %v979_v45 }
 0x6a2   :  { %998 = vrot.lane.b32.xlu1 %v2449_v17, %s2335_s29 }
 0x6a3   :  { %1074 = vrot.lane.b32.xlu0 %v2454_v18, %s2335_s29 }
 0x6a6   :  { %1152 = vrot.lane.b32.xlu1 %v2449_v17, %s2336_s30 }
 0x6aa   :  { %1230 = vrot.lane.b32.xlu1 %v2454_v18, %s2336_s30 }
 0x6ae   :  { %1228 = vrot.lane.b32.xlu1 %v2454_v18, %s2337_s4 }
 0x71a   :  { %v978_v46 = vpop.xlane.xlu0 %977 }
 0x71b   :  { %v982_v47 = vsub.f32 %v974_v38, %v978_v46 }
 0x71d   :  { %v984_v48 = vmul.f32 1.442695, %v982_v47 }
 0x71e   :  { %v981_v49 = vpop.xlane.xlu1 %980  ;;  %v1075_v50 = vpop.permute.xlu0 %1074 }
 0x71f   :  { %2203 = vpow2.f32 %v984_v48  ;;  %v983_v52 = vsub.f32 %v975_v43, %v981_v49  ;;  %2040 = vmatpush3.msra.mxu1 %v1075_v50 }
 0x720   :  { %2049 = vmatprep.subr.mxu1 %v2326_v9 }
 0x721   :  { %v986_v54 = vmul.f32 1.442695, %v983_v52 }
 0x722   :  { %v999_v55 = vpop.permute.xlu1 %998 }
 0x723   :  { %2205 = vpow2.f32 %v986_v54  ;;  %2035 = vmatpush3.msra.mxu0 %v999_v55 }
 0x724   :  { %2044 = vmatprep.subr.mxu0 %v2326_v9 }
 0x726   :  { %v1153_v62 = vpop.permute.xlu1 %1152 }
 0x729   :  { %v2204_v56 = vpop.eup %2203 }
 0x72a   :  { %v988_v57 = vsel %vm158_vm2, %v2204_v56, 0.0  ;;  %v1231_v10 = vpop.permute.xlu1 %1230 }
 0x72b   :  { %989 = vadd.xlane.f32.xlu0 %v988_v57 }
 0x72d   :  { %v2206_v58 = vpop.eup %2205 }
 0x72e   :  { %v991_v59 = vsel %vm158_vm2, %v2206_v58, 0.0  ;;  %v1229_v16 = vpop.permute.xlu1 %1228 }
 0x72f   :  { %992 = vadd.xlane.f32.xlu0 %v991_v59 }
 0x745   :  { %1150 = vrot.lane.b32.xlu0 %v2449_v17, %s2337_s4 }
 0x7b8   :  { %v990_v60 = vpop.xlane.xlu0 %989 }
 0x7b9   :  { %2207 = vrcp.f32 %v990_v60 }
 0x7bc   :  { %v993_v61 = vpop.xlane.xlu0 %992 }
 0x7bd   :  { %2209 = vrcp.f32 %v993_v61 }
 0x7c0   :  { %v1151_v15 = vpop.permute.xlu0 %1150 }
 0x7c3   :  { %v2208_v63 = vpop.eup %2207 }
 0x7c4   :  { %v995_v4 = vmul.f32 %v2208_v63, %v2204_v56 }
 0x7c6   :  { %2037 = vmatmul.mubr.msk.f32.vlgmr.msra.gmra.mrb[8].mxu0 %vm158_vm2, %v995_v4 }
 0x7c7   :  { %v2210_v7 = vpop.eup %2209  ;;  %2045 = vmatpush3.xpose.msk.msra.mxu0 %vm158_vm2, %v1153_v62  ;;  %2046 = vmatprep.mubr.msk.f32.mxu0 %vm2327_vm1, %v2326_v9 }
 0x7c8   :  { %v997_v12 = vmul.f32 %v2210_v7, %v2206_v58  ;;  %2054 = vmatprep.subr.mxu0 %v2326_v9 }
 0x7ca   :  { %2042 = vmatmul.mubr.msk.f32.vlgmr.msra.gmra.mrb[14].mxu1 %vm158_vm2, %v997_v12  ;;  %2047 = vmatmul.mubr.msk.f32.vlgmr.msra.gmra.mrb[10].mxu0 %vm158_vm2, %v1151_v15 }
 0x7cb   :  { %2050 = vmatpush3.xpose.msk.msra.mxu1 %vm158_vm2, %v1231_v10  ;;  %2051 = vmatprep.mubr.msk.f32.mxu1 %vm2327_vm1, %v2326_v9 }
 0x7cc   :  { %2059 = vmatprep.subr.mxu1 %v2326_v9  ;;  %2056 = vmatprep.mubr.msk.f32.mxu0 %vm2327_vm1, %v2326_v9 }
 0x7ce   :  { %2052 = vmatmul.mubr.msk.f32.vlgmr.msra.gmra.mrb[16].mxu1 %vm158_vm2, %v1229_v16 }
 0x7cf   :  { %2061 = vmatprep.mubr.msk.f32.mxu1 %vm2327_vm1, %v2326_v9  ;;  %v2172_v9 = vpack.i.bf16 %v2422_v5, %v2416_v2 }
 0x899   :  { %v1070_v19 = vpop.f32.mrb[8].mxu0 }
 0x89a   :  { %v2038_v20 = vpop.f32.mrb[9].mxu0 }
 0x89d   :  { %v1146_v21 = vpop.f32.mrb[14].mxu1  ;;  %v1224_v22 = vpop.f32.mrb[10].mxu0 }
 0x89e   :  { %v1306_v23 = vmul.f32 0.35355338, %v1224_v22  ;;  %v2043_v24 = vpop.f32.mrb[15].mxu1  ;;  %v2048_v25 = vpop.f32.mrb[11].mxu0 }
 0x8a0   :  { %v1308_v26 = vsel %vm158_vm2, %v1306_v23, -inf }
 0x8a1   :  { %v1302_v27 = vpop.f32.mrb[16].mxu1  ;;  %1309 = vmax.xlane.f32.xlu0 %v1308_v26 }
 0x8a2   :  { %v1307_v28 = vmul.f32 0.35355338, %v1302_v27  ;;  %v2053_v29 = vpop.f32.mrb[17].mxu1 }
 0x8a4   :  { %v1311_v30 = vsel %vm158_vm2, %v1307_v28, -inf }
 0x8a5   :  { %1312 = vmax.xlane.f32.xlu1 %v1311_v30 }
 0x8b6   :  { %1330 = vrot.lane.b32.xlu1 %v2449_v17, %s2338_s5 }
 0x8ba   :  { %2168 = vrot.lane.b32.xlu1 %v2167_v3, %s2339_s6 }
 0x8be   :  { %2173 = vrot.lane.b32.xlu1 %v2172_v9, %s2339_s6 }
 0x8c2   :  { %1486 = vrot.lane.b32.xlu1 %v2534_v36, %s2324_s25 }
 0x8c6   :  { %1494 = vrot.lane.b32.xlu1 %v1146_v21, %s2340_s7 }
 0x92e   :  { %v1310_v31 = vpop.xlane.xlu0 %1309 }
 0x92f   :  { %v1314_v32 = vsub.f32 %v1306_v23, %v1310_v31  ;;  %v63_v31 = vld [vmem:[#allocation5 + $0x38] sm:$0xff] }
 0x931   :  { %v1316_v33 = vmul.f32 1.442695, %v1314_v32 }
 0x932   :  { %v1313_v17 = vpop.xlane.xlu1 %1312 }
 0x933   :  { %2211 = vpow2.f32 %v1316_v33  ;;  %v1315_v35 = vsub.f32 %v1307_v28, %v1313_v17  ;;  %v60_v33 = vld [vmem:[#allocation5 + $0x20] sm:$0xff]  ;;  %v61_v17 = vld [vmem:[#allocation5 + $0x28] sm:$0xff] }
 0x935   :  { %v1318_v37 = vmul.f32 1.442695, %v1315_v35  ;;  %v2177_v35 = vpack.i.bf16 %v61_v17, %v60_v33 }
 0x936   :  { %v1331_v38 = vpop.permute.xlu1 %1330 }
 0x937   :  { %2213 = vpow2.f32 %v1318_v37  ;;  %2055 = vmatpush3.msra.mxu0 %v1331_v38  ;;  %v2129_v37 = vpack.c.bf16 %v61_v17, %v60_v33 }
 0x93a   :  { %v2169_v0 = vpop.permute.xlu1 %2168 }
 0x93b   :  { %v2171_v1 = vunpack.i.h.bf16 %v2169_v0  ;;  %v2170_v2 = vunpack.i.l.bf16 %v2169_v0  ;;  %v1646_v0 = vsub.s32 1, %v2436_v11 }
 0x93d   :  { %v2212_v3 = vpop.eup %2211  ;;  %v2113_v5 = vpack.c.bf16 %v2171_v1, %v2170_v2  ;;  %v64_v1 = vld [vmem:[#allocation5 + $0x40] sm:$0xff]  ;;  %v65_v2 = vld [vmem:[#allocation5 + $0x48] sm:$0xff] }
 0x93e   :  { %v1320_v39 = vsel %vm158_vm2, %v2212_v3, 0.0  ;;  %v2174_v43 = vpop.permute.xlu1 %2173 }
 0x93f   :  { %1321 = vadd.xlane.f32.xlu0 %v1320_v39  ;;  %2114 = vmatprep.subr.bf16.mxu0 %v2113_v5  ;;  %v2176_v44 = vunpack.i.h.bf16 %v2174_v43  ;;  %v2175_v45 = vunpack.i.l.bf16 %v2174_v43 }
 0x941   :  { %v2214_v36 = vpop.eup %2213  ;;  %v2117_v48 = vpack.c.bf16 %v2176_v44, %v2175_v45 }
 0x942   :  { %v1323_v40 = vsel %vm158_vm2, %v2214_v36, 0.0  ;;  %v1487_v57 = vpop.permute.xlu1 %1486 }
 0x943   :  { %1324 = vadd.xlane.f32.xlu0 %v1323_v40  ;;  %v1507_v4 = vsel %vm158_vm2, %v2502_v53, %v1487_v57 }
 0x946   :  { %v1495_v60 = vpop.permute.xlu1 %1494 }
 0x947   :  { %v1510_v7 = vsel %vm1508_vm4, %v1507_v4, %v1495_v60 }
 0x959   :  { %1406 = vrot.lane.b32.xlu0 %v2454_v18, %s2338_s5 }
 0x95d   :  { %1484 = vrot.lane.b32.xlu0 %v2532_v34, %s2324_s25 }
 0x961   :  { %1492 = vrot.lane.b32.xlu0 %v1070_v19, %s2340_s7 }
 0x9cc   :  { %v1322_v41 = vpop.xlane.xlu0 %1321 }
 0x9cd   :  { %2215 = vrcp.f32 %v1322_v41 }
 0x9d0   :  { %v1325_v42 = vpop.xlane.xlu0 %1324 }
 0x9d1   :  { %2217 = vrcp.f32 %v1325_v42 }
 0x9d4   :  { %v1407_v46 = vpop.permute.xlu0 %1406 }
 0x9d5   :  { %2060 = vmatpush3.msra.mxu1 %v1407_v46 }
 0x9d7   :  { %v2216_v47 = vpop.eup %2215 }
 0x9d8   :  { %v1327_v49 = vmul.f32 %v2216_v47, %v2212_v3  ;;  %v1485_v56 = vpop.permute.xlu0 %1484  ;;  %v1647_v3 = vrot.slane %v2443_v13, %v1646_v0 }
 0x9d9   :  { %v1506_v59 = vsel %vm158_vm2, %v2500_v51, %v1485_v56 }
 0x9da   :  { %2057 = vmatmul.mubr.msk.f32.vlgmr.msra.gmra.mrb[12].mxu0 %vm158_vm2, %v1327_v49 }
 0x9db   :  { %v2218_v50 = vpop.eup %2217  ;;  %2116 = vmatpush3.bf16.msra.mxu0 %v2113_v5  ;;  %v2137_v5 = vpack.c.bf16 %v65_v2, %v64_v1 }
 0x9dc   :  { %v1329_v18 = vmul.f32 %v2218_v50, %v2214_v36  ;;  %2118 = vmatprep.subr.bf16.mxu0 %v2117_v48  ;;  %v1493_v58 = vpop.permute.xlu0 %1492 }
 0x9dd   :  { %v1509_v61 = vsel %vm1508_vm4, %v1506_v59, %v1493_v58 }
 0x9de   :  { %2062 = vmatmul.mubr.msk.f32.vlgmr.msra.gmra.mrb[18].mxu1 %vm158_vm2, %v1329_v18 }
 0x9df   :  { %2120 = vmatpush3.bf16.msra.mxu0 %v2117_v48 }
 0x9e0   :  { %2130 = vmatprep.subr.bf16.mxu0 %v2129_v37 }
 0xaad   :  { %v1402_v34 = vpop.f32.mrb[12].mxu0 }
 0xaae   :  { %1500 = vrot.lane.b32.xlu0 %v1402_v34, %s2341_s8  ;;  %v2058_v52 = vpop.f32.mrb[13].mxu0 }
 0xab1   :  { %v1478_v54 = vpop.f32.mrb[18].mxu1 }
 0xab2   :  { %1502 = vrot.lane.b32.xlu1 %v1478_v54, %s2341_s8  ;;  %v2063_v55 = vpop.f32.mrb[19].mxu1  ;;  %1531 = vrot.lane.b32.xlu0 %v2446_v14, %s2339_s6  ;;  %v66_v54 = vld [vmem:[#allocation5 + $0x50] sm:$0xff] }
 0xab3   :  { %v67_v55 = vld [vmem:[#allocation5 + $0x58] sm:$0xff] }
 0xab4   :  { %v2141_v56 = vpack.c.bf16 %v67_v55, %v66_v54 }
 0xb20   :  { %v1501_v62 = vpop.permute.xlu0 %1500 }
 0xb21   :  { %v1512_v63 = vsel %vm1511_vm3, %v1509_v61, %v1501_v62 }
 0xb22   :  { %2072 = vmatprep.mubr.msk.f32.mxu0 %vm73_vm0, %v1512_v63 }
 0xb24   :  { %v1503_v10 = vpop.permute.xlu1 %1502  ;;  %v1532_v12 = vpop.permute.xlu0 %1531 }
 0xb25   :  { %v1513_v14 = vsel %vm1511_vm3, %v1510_v7, %v1503_v10 }
 0xb26   :  { %2073 = vmatmul.mubr.msk.f32.vlgmr.msra.gmra.mrb[14].mxu0 %vm73_vm0, %v1513_v14 }
 0xb27   :  { %2132 = vmatpush3.bf16.msra.mxu0 %v2129_v37 }
 0xbf9   :  { %v2074_v15 = vpop.f32.mrb[14].mxu0 }
 0xbfa   :  { %v1612_v16 = vadd.f32 %v2074_v15, %v1532_v12  ;;  %v1606_v19 = vpop.f32.mrb[15].mxu0 }
 0xbfb   :  { %v1607_v20 = vadd.f32 %v1606_v19, %v1532_v12 }
 0xbfc   :  { %v1616_v51 = vadd.f32 %v1612_v16, %v2430_v8 }
 0xbfd   :  { %v1615_v21 = vadd.f32 %v1607_v20, %v2424_v6  ;;  %v62_v6 = vld [vmem:[#allocation5 + $0x30] sm:$0xff] }
 0xbfe   :  { %v1620_v22 = vsel %vm73_vm0, %v1616_v51, 0.0  ;;  %v2182_v32 = vpack.i.bf16 %v63_v31, %v62_v6  ;;  %v2133_v38 = vpack.c.bf16 %v63_v31, %v62_v6 }
 0xbff   :  { %1621 = vadd.xlane.f32.xlu0 %v1620_v22  ;;  %v1617_v23 = vsel %vm73_vm0, %v1615_v21, 0.0 }
 0xc00   :  { %1618 = vadd.xlane.f32.xlu1 %v1617_v23  ;;  %2134 = vmatprep.subr.bf16.mxu0 %v2133_v38 }
 0xc01   :  { %2136 = vmatpush3.bf16.msra.mxu0 %v2133_v38 }
 0xc02   :  { %2138 = vmatprep.subr.bf16.mxu0 %v2137_v5 }
 0xc05   :  { %2140 = vmatpush3.bf16.msra.mxu0 %v2137_v5 }
 0xc06   :  { %2142 = vmatprep.subr.bf16.mxu0 %v2141_v56 }
 0xc09   :  { %2144 = vmatpush3.bf16.msra.mxu0 %v2141_v56 }
 0xc8c   :  { %v1622_v53 = vpop.xlane.xlu0 %1621 }
 0xc8d   :  { %v1625_v24 = vmul.f32 0.03125, %v1622_v53  ;;  %v1619_v25 = vpop.xlane.xlu1 %1618 }
 0xc8e   :  { %v1624_v26 = vmul.f32 0.03125, %v1619_v25 }
 0xc8f   :  { %v1627_v27 = vsub.f32 %v1616_v51, %v1625_v24 }
 0xc90   :  { %v1626_v28 = vsub.f32 %v1615_v21, %v1624_v26 }
 0xc91   :  { %v1629_v29 = vmul.f32 %v1627_v27, %v1627_v27 }
 0xc92   :  { %v1628_v30 = vmul.f32 %v1626_v28, %v1626_v28 }
 0xc93   :  { %v1633_v9 = vsel %vm73_vm0, %v1629_v29, 0.0 }
 0xc94   :  { %1634 = vadd.xlane.f32.xlu1 %v1633_v9  ;;  %v1630_v8 = vsel %vm73_vm0, %v1628_v30, 0.0 }
 0xc95   :  { %1631 = vadd.xlane.f32.xlu0 %v1630_v8 }
 0xca5   :  { %2183 = vrot.lane.b32.xlu1 %v2182_v32, %s2328_s2 }
 0xca9   :  { %1748 = vrot.lane.b32.xlu1 %v1647_v3, %s2329_s21 }
 0xcab   :  { %2178 = vrot.lane.b32.xlu0 %v2177_v35, %s2328_s2 }
 0xd21   :  { %v1635_v39 = vpop.xlane.xlu1 %1634 }
 0xd22   :  { %v1637_v36 = vmul.f32 0.03125, %v1635_v39  ;;  %v1632_v40 = vpop.xlane.xlu0 %1631 }
 0xd23   :  { %v1636_v41 = vmul.f32 0.03125, %v1632_v40 }
 0xd24   :  { %v1639_v42 = vadd.f32 1e-05, %v1637_v36 }
 0xd25   :  { %v1638_v43 = vadd.f32 1e-05, %v1636_v41  ;;  %v2184_v11 = vpop.permute.xlu1 %2183 }
 0xd26   :  { %2219 = vrsqrt.f32 %v1639_v42  ;;  %v2179_v44 = vpop.permute.xlu0 %2178  ;;  %v2186_v45 = vunpack.i.h.bf16 %v2184_v11  ;;  %v2185_v46 = vunpack.i.l.bf16 %v2184_v11 }
 0xd27   :  { %2221 = vrsqrt.f32 %v1638_v43  ;;  %v2181_v13 = vunpack.i.h.bf16 %v2179_v44  ;;  %v2180_v47 = vunpack.i.l.bf16 %v2179_v44 }
 0xd28   :  { %v2125_v49 = vpack.c.bf16 %v2186_v45, %v2185_v46 }
 0xd29   :  { %v2121_v48 = vpack.c.bf16 %v2181_v13, %v2180_v47  ;;  %v1749_v63 = vpop.permute.xlu1 %1748 }
 0xd2b   :  { %2122 = vmatprep.subr.bf16.mxu1 %v2121_v48 }
 0xd2c   :  { %2124 = vmatpush3.bf16.msra.mxu1 %v2121_v48 }
 0xd2d   :  { %2126 = vmatprep.subr.bf16.mxu1 %v2125_v49 }
 0xd30   :  { %v2220_v50 = vpop.eup %2219  ;;  %2128 = vmatpush3.bf16.msra.mxu1 %v2125_v49 }
 0xd31   :  { %v2222_v18 = vpop.eup %2221  ;;  %v1643_v52 = vmul.f32 %v2220_v50, %v1627_v27 }
 0xd32   :  { %v1642_v34 = vmul.f32 %v2222_v18, %v1626_v28 }
 0xd34   :  { %2083 = vmatprep.mubr.msk.f32.mxu1 %vm73_vm0, %v1642_v34 }
 0xd35   :  { %2084 = vmatmul.mubr.msk.f32.vlgmr.msra.gmra.mrb[20].mxu1 %vm73_vm0, %v1643_v52 }
 0xe08   :  { %v2085_v57 = vpop.f32.mrb[20].mxu1 }
 0xe09   :  { %v1742_v58 = vadd.f32 %v2085_v57, %v1647_v3  ;;  %v1736_v59 = vpop.f32.mrb[21].mxu1 }
 0xe0a   :  { %v1737_v60 = vadd.f32 %v1736_v59, %v1647_v3 }
 0xe0b   :  { %v1746_v62 = vmax.f32 %v1742_v58, 0.0 }
 0xe0c   :  { %v1745_v61 = vmax.f32 %v1737_v60, 0.0 }
 0xe0e   :  { %2102 = vmatprep.mubr.msk.f32.mxu0 %vm1751_vm5, %v1745_v61 }
 0xe0f   :  { %2103 = vmatmul.mubr.msk.f32.vlgmr.msra.gmra.mrb[16].mxu0 %vm1751_vm5, %v1746_v62 }
 0xee2   :  { %v2104_v4 = vpop.f32.mrb[16].mxu0 }
 0xee3   :  { %v1830_v7 = vadd.f32 %v2104_v4, %v1749_v63  ;;  %v1824_v10 = vpop.f32.mrb[17].mxu0 }
 0xee4   :  { %v1825_v14 = vadd.f32 %v1824_v10, %v1749_v63 }
 0xee5   :  { %v1834_v12 = vadd.f32 %v1830_v7, %v1643_v52 }
 0xee6   :  { %v1833_v15 = vadd.f32 %v1825_v14, %v1642_v34 }
 0xee7   :  { %v1838_v16 = vsel %vm73_vm0, %v1834_v12, 0.0 }
 0xee8   :  { %1839 = vadd.xlane.f32.xlu1 %v1838_v16  ;;  %v1835_v19 = vsel %vm73_vm0, %v1833_v15, 0.0 }
 0xee9   :  { %1836 = vadd.xlane.f32.xlu0 %v1835_v19 }
 0xf75   :  { %v1840_v20 = vpop.xlane.xlu1 %1839 }
 0xf76   :  { %v1842_v51 = vmul.f32 0.03125, %v1840_v20  ;;  %v1837_v21 = vpop.xlane.xlu0 %1836 }
 0xf77   :  { %v1841_v22 = vmul.f32 0.03125, %v1837_v21 }
 0xf78   :  { %v1844_v23 = vsub.f32 %v1834_v12, %v1842_v51 }
 0xf79   :  { %v1843_v53 = vsub.f32 %v1833_v15, %v1841_v22 }
 0xf7a   :  { %v1846_v26 = vmul.f32 %v1844_v23, %v1844_v23 }
 0xf7b   :  { %v1845_v24 = vmul.f32 %v1843_v53, %v1843_v53 }
 0xf7c   :  { %v1850_v27 = vsel %vm73_vm0, %v1846_v26, 0.0 }
 0xf7d   :  { %v1847_v25 = vsel %vm73_vm0, %v1845_v24, 0.0 }
 0xf7e   :  { %1848 = vadd.xlane.f32.xlu0 %v1847_v25 }
 0xf82   :  { %1851 = vadd.xlane.f32.xlu0 %v1850_v27 }
0x100b   :  { %v1849_v28 = vpop.xlane.xlu0 %1848 }
0x100c   :  { %v1853_v29 = vmul.f32 0.03125, %v1849_v28 }
0x100e   :  { %v1855_v30 = vadd.f32 1e-05, %v1853_v29 }
0x100f   :  { %v1852_v9 = vpop.xlane.xlu0 %1851 }
0x1010   :  { %2223 = vrsqrt.f32 %v1855_v30  ;;  %v1854_v8 = vmul.f32 0.03125, %v1852_v9 }
0x1012   :  { %v1856_v6 = vadd.f32 1e-05, %v1854_v8 }
0x1014   :  { %2225 = vrsqrt.f32 %v1856_v6 }
0x101a   :  { %v2224_v31 = vpop.eup %2223 }
0x101b   :  { %v1859_v32 = vmul.f32 %v2224_v31, %v1843_v53 }
0x101d   :  { %1861 = vst.msk [vmem:[#allocation8] sm:$0xff] %vm73_vm0, %v1859_v32 }
0x101e   :  { %v2226_v33 = vpop.eup %2225 }
0x101f   :  { %v1860_v17 = vmul.f32 %v2226_v33, %v1844_v23 }
0x1021   :  { %1862 = vst.msk [vmem:[#allocation8 + $0x8] sm:$0xff] %vm73_vm0, %v1860_v17 }
0x1022   :  { %2304 = shalt.err (!%p2301_p0)
}
0x1023   :  { %s2305_s13 = scalar_lea.hbm %s2628_s3, 256 }
0x1024   :  { %p2306_p1 = scmp.ne.s32.totalorder %s2628_s3, %s2305_s13  ;;  %p2309_p2 = scmp.lt.u32.totalorder %s2305_s13, %s2628_s3 }
0x1026   :  { %p2311_p3 = pnand %p2309_p2, %p2306_p1 }
0x1028   :  { %2314 = shalt.err (!%p2311_p3)
}
0x1029   :  { %1874 = dma.vmem_to_hbm [thread:$0]  %s1869_s9, 256, %s2628_s3, [#allocation4], %s2323_s24, %s2323_s24, %s2324_s25  }
0x102a   :  { %2319 = dma.done.wait [#allocation4], 256  }
0x102b   :  { %2320 = vsyncadd [#allocation4], 4294967040 }
0x102c   :  { %1878 = vsyncpa [#allocation3], 1 }
0x102d   :  { %1879 = vsyncpa [#allocation6], 1 }
0x102e   :  { %1880 = vsyncpa [#allocation4], 1 }

</bundles_post_ra>
